<compile_context>
chip_gen: v7x
topology: tpu7x:2x2x1
jax: 0.10.0
libtpu: 0.0.40
codegen_flags: <defaults>
</compile_context>

<pallas_src>
import functools
import math

import jax
import jax.numpy as jnp
from jax import lax
from jax.experimental import pallas as pl
from jax.experimental.pallas import tpu as pltpu


def _num_tensorcores():
    """Best-effort TensorCore-per-chip count (2 on v7x/v4/v5p, else 1)."""
    try:
        info = pltpu.get_tpu_info()
        for attr in ("num_cores", "core_count", "num_tensorcores",
                     "tensorcore_count"):
            n = getattr(info, attr, None)
            if isinstance(n, int) and n > 0:
                return n
    except Exception:
        pass
    try:
        kind = jax.devices()[0].device_kind.lower()
        if any(tag in kind for tag in ("v7", "7x", "v4", "v5p", "v5 p")):
            return 2
    except Exception:
        pass
    return 1


def tier_mvm_kernel(x_ref, w_ref, o_ref, *, tier_rows, n_vertical, sub_cols,
                    lane_chunks):
    # x_ref : (1, in_features)            if lane_chunks (token as one row)
    #         (n_vertical, tier_rows)     otherwise (chunk i on sublane-row i)
    # w_ref : (in_features, cols_block)   all vertical tiers of this column block
    # o_ref : (1, cols_block)             aggregated output for this block
    cols_block = o_ref.shape[-1]
    n_sub = cols_block // sub_cols
    unroll = int(min(max(n_vertical, 1), 8))  # full unroll short chains, 8 otherwise

    for s in range(n_sub):          # static loop over <=1024-lane sub-slabs;
        c0 = s * sub_cols           # each acc dies at its store (no spills)

        def body(i, acc):
            r0 = pl.multiple_of(i * tier_rows, tier_rows)
            if lane_chunks:
                xi = x_ref[:, pl.ds(r0, tier_rows)]          # (1, tier_rows)
            else:
                xi = x_ref[pl.ds(i, 1), :]                   # (1, tier_rows)
            wi = w_ref[pl.ds(r0, tier_rows), pl.ds(c0, sub_cols)]
            # ascending i preserves the module's digital_add summation order;
            # f32 accumulation matches the PyTorch reference.
            # TODO(synk): if a bundle dump shows MXU weight-push (not DMA) is
            # critical on v7x, switch to the VPU reduction
            # acc += (xi.reshape(tier_rows, 1) * wi).sum(0, keepdims=True).
            return acc + jnp.dot(xi, wi, preferred_element_type=jnp.float32)

        acc = lax.fori_loop(
            0, n_vertical, body,
            jnp.zeros((1, sub_cols), jnp.float32),
            unroll=unroll,
        )
        o_ref[:, pl.ds(c0, sub_cols)] = acc.astype(o_ref.dtype)


def _choose_cols_block(in_features, n_horizontal, tier_cols, dtype_bytes,
                       num_cores):
    """Pick how many column tiers to fold into one grid step.

    Priorities: (1) per-buffer weight block fits the generation's cap,
    (2) block count splits evenly across TensorCores (v7x megacore only),
    (3) block is lane-contiguous enough (>= 512 lanes when possible),
    (4) block size close to the generation's DMA-amortization target.
    """
    bytes_per_col_tier = in_features * tier_cols * dtype_bytes
    if num_cores >= 2:
        target_bytes, max_block_bytes = 4 << 20, 8 << 20     # v7x: 64 MiB VMEM/TC
    else:
        target_bytes, max_block_bytes = 8 << 20, 16 << 20    # v5e/v6e: 128 MiB VMEM

    contig_floor = min(512, n_horizontal * tier_cols)
    best_k, best_key = 1, None
    for k in range(1, n_horizontal + 1):
        if n_horizontal % k != 0:
            continue
        blk_bytes = k * bytes_per_col_tier
        n_blocks = n_horizontal // k
        fits = (blk_bytes <= max_block_bytes) or (k == 1)
        balanced = (num_cores == 1) or (n_blocks % num_cores == 0)
        contiguous = k * tier_cols >= contig_floor
        key = (fits, balanced, contiguous, -abs(blk_bytes - target_bytes))
        if best_key is None or key > best_key:
            best_k, best_key = k, key
    return best_k * tier_cols


def _choose_sub_cols(cols_block, max_sub=1024):
    """Largest divisor of cols_block that is <= max_sub (multiple of 128)."""
    sub = min(cols_block, max_sub)
    while cols_block % sub:
        sub -= 128
    return sub


def tier_mvm(token, weight, tier_shape):
    """Tiled MVM: token (in_features,) @ weight (in_features, out_features)."""
    tier_rows, tier_cols = tier_shape
    in_features, out_features = weight.shape
    n_vertical = math.ceil(in_features / tier_rows)
    n_horizontal = math.ceil(out_features / tier_cols)
    # The traced graph assumes full tiers; ragged last tiers would need
    # padding of token/weight before the kernel.
    assert in_features == n_vertical * tier_rows
    assert out_features == n_horizontal * tier_cols
    assert tier_rows % 8 == 0, "tier_rows must be sublane (8) aligned"
    assert tier_cols % 128 == 0, "tier_cols must be lane (128) aligned"

    num_cores = _num_tensorcores()
    w_bytes = jnp.dtype(weight.dtype).itemsize
    x_bytes = jnp.dtype(token.dtype).itemsize
    cols_block = _choose_cols_block(in_features, n_horizontal, tier_cols,
                                    w_bytes, num_cores)
    n_col_blocks = out_features // cols_block
    sub_cols = _choose_sub_cols(cols_block)

    # Token layout: a single lane-major row when chunks are 128-lane aligned
    # (avoids per-iteration dynamic sublane selects); otherwise chunk i on
    # sublane-row i as before.
    lane_chunks = (tier_rows % 128 == 0)
    if lane_chunks:
        x_in = token.reshape(1, in_features)
        x_spec = pl.BlockSpec((1, in_features), lambda j: (0, 0))
    else:
        x_in = token.reshape(n_vertical, tier_rows)
        x_spec = pl.BlockSpec((n_vertical, tier_rows), lambda j: (0, 0))

    # Explicit VMEM budget: double-buffered weight block + token + out block,
    # with headroom; clamped to generation-appropriate ranges.
    w_block_bytes = in_features * cols_block * w_bytes
    token_bytes = in_features * x_bytes
    o_block_bytes = cols_block * x_bytes
    vmem_limit = 2 * (w_block_bytes + token_bytes + o_block_bytes) + (8 << 20)
    vmem_cap = (48 << 20) if num_cores >= 2 else (96 << 20)
    vmem_limit = int(min(max(vmem_limit, 32 << 20), vmem_cap))

    kernel = functools.partial(
        tier_mvm_kernel,
        tier_rows=tier_rows,
        n_vertical=n_vertical,
        sub_cols=sub_cols,
        lane_chunks=lane_chunks,
    )

    out = pl.pallas_call(
        kernel,
        out_shape=jax.ShapeDtypeStruct((1, out_features), token.dtype),
        grid_spec=pltpu.PrefetchScalarGridSpec(
            num_scalar_prefetch=0,
            grid=(n_col_blocks,),  # purely parallel over column-tier blocks
            in_specs=[
                # full token, constant block index -> fetched once, resident
                x_spec,
                # all vertical tiers of column-tier block j (default 2-deep
                # pipelining; deeper buffering would only burn VMEM)
                pl.BlockSpec((in_features, cols_block), lambda j: (0, j)),
            ],
            out_specs=pl.BlockSpec((1, cols_block), lambda j: (0, j)),
        ),
        compiler_params=pltpu.CompilerParams(
            dimension_semantics=("parallel",),
            vmem_limit_bytes=vmem_limit,
        ),
        cost_estimate=pl.CostEstimate(
            flops=2 * in_features * out_features,
            bytes_accessed=(
                in_features * out_features * w_bytes
                + in_features * x_bytes
                + out_features * x_bytes
            ),
            transcendentals=0,
        ),
    )(x_in, weight)

    # torch.cat of the aggregated per-column-tier outputs -> 1-D vector
    return out.reshape(out_features)


def tier_mvm_reference(token, weight, tier_shape):
    """Plain-JAX replica of TierMVM.forward's loop structure (for checking)."""
    tier_rows, tier_cols = tier_shape
    in_features, out_features = weight.shape
    n_vertical = in_features // tier_rows
    n_horizontal = out_features // tier_cols

    chunks = [token[i * tier_rows:(i + 1) * tier_rows] for i in range(n_vertical)]
    outputs = [
        [
            chunks[i] @ weight[i * tier_rows:(i + 1) * tier_rows,
                               j * tier_cols:(j + 1) * tier_cols]
            for j in range(n_horizontal)
        ]
        for i in range(n_vertical)
    ]
    aggregated = []
    for j in range(n_horizontal):
        temp = outputs[0][j]
        for i in range(1, n_vertical):
            temp = temp + outputs[i][j]  # digital_add
        aggregated.append(temp)
    return jnp.concatenate(aggregated) if n_horizontal > 1 else aggregated[0]


def _check(key, in_features, out_features, tier_shape):
    kx, kw = jax.random.split(key)
    token = jax.random.normal(kx, (in_features,), dtype=jnp.float32)
    weight = (
        jax.random.normal(kw, (in_features, out_features), dtype=jnp.float32)
        * (1.0 / math.sqrt(in_features))
    )
    y = jax.block_until_ready(tier_mvm(token, weight, tier_shape))
    y_ref = tier_mvm_reference(token, weight, tier_shape)
    assert y.shape == (out_features,)
    assert jnp.allclose(y, y_ref, rtol=1e-5, atol=1e-5)


if __name__ == "__main__":
    key = jax.random.PRNGKey(0)
    k1, k2 = jax.random.split(key)

    # Base module configuration (small, tile-aligned):
    #   tier_shape = (128, 128), weight (256, 256) -> 2x2 tiers
    _check(k1, 256, 256, (128, 128))

    # Slightly larger config exercising multi-column-tier blocks and a longer
    # in-kernel digital_add chain: weight (512, 1024) -> 4x8 tiers
    _check(k2, 512, 1024, (128, 128))

    print("KERNEL_OK")
</pallas_src>

<mosaic_0001>
module attributes {stable_mosaic.version = 11 : i64} {
  func.func @tier_mvm_kernel(%arg0: i32, %arg1: memref<1x256xf32, #tpu.memory_space<vmem>>, %arg2: memref<256x256xf32, #tpu.memory_space<vmem>>, %arg3: memref<1x256xf32, #tpu.memory_space<vmem>>) attributes {dimension_semantics = [#tpu.dimension_semantics<parallel>], iteration_bounds = array<i64: 1>, scalar_prefetch = 0 : i64, scratch_operands = 0 : i64, tpu.core_type = #tpu.core_type<tc>, window_params = [{pipeline_mode = #tpu.pipeline_mode<synchronous>, transform_indices = @transform_0, window_bounds = array<i64: 1, 256>}, {transform_indices = @transform_1, window_bounds = array<i64: 256, 256>}, {transform_indices = @transform_2, window_bounds = array<i64: 1, 256>}]} {
    %cst = arith.constant 0.000000e+00 : f32
    %0 = vector.broadcast %cst : f32 to vector<1x256xf32>
    %c0_i32 = arith.constant 0 : i32
    %c128_i32 = arith.constant 128 : i32
    %1 = arith.muli %c0_i32, %c128_i32 : i32
    %2 = tpu.assume_multiple %1, 128 : i32
    %c0 = arith.constant 0 : index
    %3 = arith.index_cast %2 : i32 to index
    %4 = vector.load %arg1[%c0, %3] : memref<1x256xf32, #tpu.memory_space<vmem>>, vector<1x128xf32>
    %5 = arith.index_cast %2 : i32 to index
    %c0_0 = arith.constant 0 : index
    %6 = vector.load %arg2[%5, %c0_0] : memref<256x256xf32, #tpu.memory_space<vmem>>, vector<128x256xf32>
    %cst_1 = arith.constant dense<0.000000e+00> : vector<1x256xf32>
    %7 = tpu.matmul %4, %6, %cst_1 {dimension_numbers = #tpu.dot_dimension_numbers<[1], [0], [0], [1], [0, 0, 1, 1], [], []>} : vector<1x128xf32>, vector<128x256xf32>, vector<1x256xf32> -> vector<1x256xf32>
    %8 = arith.addf %0, %7 : vector<1x256xf32>
    %c1_i32 = arith.constant 1 : i32
    %c128_i32_2 = arith.constant 128 : i32
    %9 = arith.muli %c1_i32, %c128_i32_2 : i32
    %10 = tpu.assume_multiple %9, 128 : i32
    %c0_3 = arith.constant 0 : index
    %11 = arith.index_cast %10 : i32 to index
    %12 = vector.load %arg1[%c0_3, %11] : memref<1x256xf32, #tpu.memory_space<vmem>>, vector<1x128xf32>
    %13 = arith.index_cast %10 : i32 to index
    %c0_4 = arith.constant 0 : index
    %14 = vector.load %arg2[%13, %c0_4] : memref<256x256xf32, #tpu.memory_space<vmem>>, vector<128x256xf32>
    %cst_5 = arith.constant dense<0.000000e+00> : vector<1x256xf32>
    %15 = tpu.matmul %12, %14, %cst_5 {dimension_numbers = #tpu.dot_dimension_numbers<[1], [0], [0], [1], [0, 0, 1, 1], [], []>} : vector<1x128xf32>, vector<128x256xf32>, vector<1x256xf32> -> vector<1x256xf32>
    %16 = arith.addf %8, %15 : vector<1x256xf32>
    %c2_i32 = arith.constant 2 : i32
    %c0_6 = arith.constant 0 : index
    %c0_7 = arith.constant 0 : index
    %17 = vector.load %arg3[%c0_6, %c0_7] : memref<1x256xf32, #tpu.memory_space<vmem>>, vector<1x256xf32>
    tpu.vector_store %arg3[%c0_6, %c0_7], %16 {strides = array<i32>} : memref<1x256xf32, #tpu.memory_space<vmem>>, vector<1x256xf32>,
    return
  }
  func.func @transform_0(%arg0: i32) -> (i32, i32) {
    %c0_i32 = arith.constant 0 : i32
    %c0_i32_0 = arith.constant 0 : i32
    %c0_i32_1 = arith.constant 0 : i32
    return %c0_i32, %c0_i32_0 : i32, i32
  }
  func.func @transform_1(%arg0: i32) -> (i32, i32) {
    %c0_i32 = arith.constant 0 : i32
    %c0_i32_0 = arith.constant 0 : i32
    return %c0_i32, %arg0 : i32, i32
  }
  func.func @transform_2(%arg0: i32) -> (i32, i32) {
    %c0_i32 = arith.constant 0 : i32
    %c0_i32_0 = arith.constant 0 : i32
    return %c0_i32, %arg0 : i32, i32
  }
}

</mosaic_0001>

<bundles_post_ra>
// kernel: tpu_custom_call.1
= control target key start
LH: loop header
LB: loop body
LE: loop exit
PB: predicated region body
PF: predicated region fallthrough
CT: control target
= control target key end

     0   :  { %7 = vsyncpa [#allocation3], 0  ;;  %s503_s0 = inlined_call_operand.hbm [shape: f32[1,256], index: 0, kind: input, shape index: {}]   ;;  %s504_s1 = inlined_call_operand.hbm [shape: f32[256,256], index: 1, kind: input, shape index: {}]   ;;  %s505_s2 = inlined_call_operand.hbm [shape: f32[1,256], index: 2, kind: output, shape index: {}]  }
   0x1   :  { %8 = vsyncpa [#allocation6], 0 }
   0x2   :  { %9 = vsyncpa [#allocation4], 0  ;;  %s438_s9 = smov [#allocation2]   ;;  %s439_s11 = smov [#allocation5]  }
   0x3   :  { %s16_s10 = sshll.u32 %s438_s9, 4  ;;  %s25_s12 = sshll.u32 %s439_s11, 4  ;;  %s17_s10 = int_to_ptr.vmem [resolvable:$true] %s16_s10  ;;  %s460_s12 = int_to_ptr.vmem [resolvable:$true] %s25_s12 }
   0x4   :  { %s366_s15 = scalar_lea.hbm %s503_s0, 32 }
   0x5   :  { %p367_p0 = scmp.ne.s32.totalorder %s503_s0, %s366_s15  ;;  %p370_p1 = scmp.lt.u32.totalorder %s366_s15, %s503_s0 }
   0x7   :  { %p372_p2 = pnand %p370_p1, %p367_p0 }
   0x9   :  { %375 = shalt.err (!%p372_p2)
}
   0xa   :  { %s376_s20 = scalar_lea.vmem %s17_s10, 32  ;;  %p381_p4 = scmp.lt.s32.totalorder %s17_s10, %s17_s10 }
   0xb   :  { %p377_p3 = scmp.ne.s32.totalorder %s17_s10, %s376_s20  ;;  %p382_p5 = scmp.lt.s32.totalorder %s376_s20, %s376_s20 }
   0xd   :  { %p383_p6 = por %p382_p5, %p381_p4 }
   0xf   :  { %p384_p7 = pnand %p383_p6, %p377_p3 }
  0x11   :  { %387 = shalt.err (!%p384_p7)
}
  0x12   :  { %19 = dma.hbm_to_vmem [thread:$0]  %s503_s0, 32, %s17_s10, [#allocation3]  }
  0x13   :  { %s388_s25 = scalar_lea.hbm %s504_s1, 8192 }
  0x14   :  { %p389_p8 = scmp.ne.s32.totalorder %s504_s1, %s388_s25  ;;  %p392_p9 = scmp.lt.u32.totalorder %s388_s25, %s504_s1 }
  0x16   :  { %p394_p10 = pnand %p392_p9, %p389_p8 }
  0x18   :  { %397 = shalt.err (!%p394_p10)
}
  0x19   :  { %s398_s30 = scalar_lea.vmem %s460_s12, 8192  ;;  %p403_p12 = scmp.lt.s32.totalorder %s460_s12, %s460_s12 }
  0x1a   :  { %p399_p11 = scmp.ne.s32.totalorder %s460_s12, %s398_s30  ;;  %p404_p13 = scmp.lt.s32.totalorder %s398_s30, %s398_s30 }
  0x1c   :  { %p405_p0 = por %p404_p13, %p403_p12 }
  0x1e   :  { %p406_p1 = pnand %p405_p0, %p399_p11 }
  0x20   :  { %409 = shalt.err (!%p406_p1)
}
  0x21   :  { %s440_s0 = smov 256   ;;  %s441_s3 = smov 16  }
  0x22   :  { %31 = dma.hbm_to_vmem [thread:$0]  %s504_s1, 8192, %s460_s12, [#allocation6], %s440_s0, %s440_s0, %s441_s3  }
  0x23   :  { %432 = dma.done.wait [#allocation3], 32  }
  0x24   :  { %433 = vsyncadd [#allocation3], 4294967264 }
  0x25   :  { %434 = dma.done.wait [#allocation6], 8192  }
  0x26   :  { %435 = vsyncadd [#allocation6], 4294959104  ;;  %v442_v0 = vmov 0.0   ;;  %v80_v1 = vld [vmem:[#allocation5 + $0x108] sm:$0xff]  ;;  %v82_v2 = vld [vmem:[#allocation5 + $0x118] sm:$0xff]  ;;  %s444_s1 = smov [#allocation7]  }
  0x27   :  { %175 = vmatprep.mubr.f32.mxu1 %v442_v0  ;;  %246 = vmatprep.mubr.f32.mxu0 %v442_v0  ;;  %v43_v3 = vld [vmem:[#allocation5 + $0x8] sm:$0xff]  ;;  %v293_v4 = vpack.c.bf16 %v82_v2, %v80_v1  ;;  %v45_v5 = vld [vmem:[#allocation5 + $0x18] sm:$0xff]  ;;  %v79_v6 = vld [vmem:[#allocation5 + $0x100] sm:$0xff]  ;;  %s282_s6 = sshll.u32 %s444_s1, 4  ;;  %s283_s6 = int_to_ptr.vmem [resolvable:$true] %s282_s6 }
  0x28   :  { %v81_v7 = vld [vmem:[#allocation5 + $0x110] sm:$0xff]  ;;  %v325_v8 = vpack.c.bf16 %v45_v5, %v43_v3  ;;  %v42_v10 = vld [vmem:[#allocation5] sm:$0xff]  ;;  %v84_v12 = vld [vmem:[#allocation5 + $0x128] sm:$0xff]  ;;  %s410_s7 = scalar_lea.vmem %s283_s6, 32  ;;  %p415_p3 = scmp.lt.s32.totalorder %s283_s6, %s283_s6 }
  0x29   :  { %v295_v9 = vpack.c.bf16 %v81_v7, %v79_v6  ;;  %v44_v11 = vld [vmem:[#allocation5 + $0x10] sm:$0xff]  ;;  %294 = vmatprep.subr.bf16.mxu1 %v293_v4  ;;  %v86_v14 = vld [vmem:[#allocation5 + $0x138] sm:$0xff]  ;;  %v47_v15 = vld [vmem:[#allocation5 + $0x28] sm:$0xff]  ;;  %p411_p2 = scmp.ne.s32.totalorder %s283_s6, %s410_s7  ;;  %p416_p4 = scmp.lt.s32.totalorder %s410_s7, %s410_s7 }
  0x2a   :  { %v327_v13 = vpack.c.bf16 %v44_v11, %v42_v10  ;;  %v49_v16 = vld [vmem:[#allocation5 + $0x38] sm:$0xff]  ;;  %326 = vmatprep.subr.bf16.mxu0 %v325_v8  ;;  %v297_v17 = vpack.c.bf16 %v86_v14, %v84_v12  ;;  %v83_v19 = vld [vmem:[#allocation5 + $0x120] sm:$0xff]  ;;  %v85_v20 = vld [vmem:[#allocation5 + $0x130] sm:$0xff] }
  0x2b   :  { %296 = vmatpush1.bf16.msra.mxu1 %v295_v9  ;;  %v329_v18 = vpack.c.bf16 %v49_v16, %v47_v15  ;;  %v46_v21 = vld [vmem:[#allocation5 + $0x20] sm:$0xff]  ;;  %v299_v22 = vpack.c.bf16 %v85_v20, %v83_v19  ;;  %v48_v23 = vld [vmem:[#allocation5 + $0x30] sm:$0xff]  ;;  %v88_v24 = vld [vmem:[#allocation5 + $0x148] sm:$0xff]  ;;  %p417_p5 = por %p416_p4, %p415_p3 }
  0x2c   :  { %328 = vmatpush1.bf16.msra.mxu0 %v327_v13  ;;  %v90_v25 = vld [vmem:[#allocation5 + $0x158] sm:$0xff]  ;;  %298 = vmatprep.subr.bf16.mxu1 %v297_v17  ;;  %v331_v26 = vpack.c.bf16 %v48_v23, %v46_v21  ;;  %v51_v28 = vld [vmem:[#allocation5 + $0x48] sm:$0xff]  ;;  %v87_v30 = vld [vmem:[#allocation5 + $0x140] sm:$0xff] }
  0x2d   :  { %330 = vmatprep.subr.bf16.mxu0 %v329_v18  ;;  %v301_v27 = vpack.c.bf16 %v90_v25, %v88_v24  ;;  %v53_v29 = vld [vmem:[#allocation5 + $0x58] sm:$0xff]  ;;  %v89_v32 = vld [vmem:[#allocation5 + $0x150] sm:$0xff]  ;;  %v50_v33 = vld [vmem:[#allocation5 + $0x40] sm:$0xff]  ;;  %p418_p6 = pnand %p417_p5, %p411_p2 }
  0x2e   :  { %v333_v31 = vpack.c.bf16 %v53_v29, %v51_v28  ;;  %v52_v34 = vld [vmem:[#allocation5 + $0x50] sm:$0xff]  ;;  %v303_v35 = vpack.c.bf16 %v89_v32, %v87_v30  ;;  %v92_v36 = vld [vmem:[#allocation5 + $0x168] sm:$0xff]  ;;  %v94_v37 = vld [vmem:[#allocation5 + $0x178] sm:$0xff] }
  0x2f   :  { %300 = vmatpush1.bf16.msra.mxu1 %v299_v22  ;;  %v55_v38 = vld [vmem:[#allocation5 + $0x68] sm:$0xff]  ;;  %v335_v39 = vpack.c.bf16 %v52_v34, %v50_v33  ;;  %v305_v40 = vpack.c.bf16 %v94_v37, %v92_v36  ;;  %v57_v41 = vld [vmem:[#allocation5 + $0x78] sm:$0xff]  ;;  %v91_v42 = vld [vmem:[#allocation5 + $0x160] sm:$0xff]  ;;  %v259_v37 = vlaneseq }
  0x30   :  { %332 = vmatpush1.bf16.msra.mxu0 %v331_v26  ;;  %302 = vmatprep.subr.bf16.mxu1 %v301_v27  ;;  %v93_v43 = vld [vmem:[#allocation5 + $0x170] sm:$0xff]  ;;  %v337_v44 = vpack.c.bf16 %v57_v41, %v55_v38  ;;  %v54_v45 = vld [vmem:[#allocation5 + $0x60] sm:$0xff]  ;;  %v96_v47 = vld [vmem:[#allocation5 + $0x188] sm:$0xff] }
  0x31   :  { %334 = vmatprep.subr.bf16.mxu0 %v333_v31  ;;  %v56_v46 = vld [vmem:[#allocation5 + $0x70] sm:$0xff]  ;;  %v98_v48 = vld [vmem:[#allocation5 + $0x198] sm:$0xff]  ;;  %v59_v49 = vld [vmem:[#allocation5 + $0x88] sm:$0xff]  ;;  %v307_v51 = vpack.c.bf16 %v93_v43, %v91_v42  ;;  %vm273_vm0 = vcmp.lt.s32.totalorder %v259_v37, 256 }
  0x32   :  { %v61_v50 = vld [vmem:[#allocation5 + $0x98] sm:$0xff]  ;;  %v339_v52 = vpack.c.bf16 %v56_v46, %v54_v45  ;;  %v309_v53 = vpack.c.bf16 %v98_v48, %v96_v47  ;;  %v95_v54 = vld [vmem:[#allocation5 + $0x180] sm:$0xff]  ;;  %v97_v55 = vld [vmem:[#allocation5 + $0x190] sm:$0xff] }
  0x33   :  { %304 = vmatpush1.bf16.msra.mxu1 %v303_v35  ;;  %v58_v56 = vld [vmem:[#allocation5 + $0x80] sm:$0xff]  ;;  %v341_v57 = vpack.c.bf16 %v61_v50, %v59_v49  ;;  %v60_v58 = vld [vmem:[#allocation5 + $0x90] sm:$0xff]  ;;  %v100_v59 = vld [vmem:[#allocation5 + $0x1a8] sm:$0xff]  ;;  %v311_v63 = vpack.c.bf16 %v97_v55, %v95_v54  ;;  %v443_v35 = vmov 1966171168  }
  0x34   :  { %336 = vmatpush1.bf16.msra.mxu0 %v335_v39  ;;  %306 = vmatprep.subr.bf16.mxu1 %v305_v40  ;;  %v102_v60 = vld [vmem:[#allocation5 + $0x1b8] sm:$0xff]  ;;  %v63_v61 = vld [vmem:[#allocation5 + $0xa8] sm:$0xff]  ;;  %v343_v0 = vpack.c.bf16 %v60_v58, %v58_v56  ;;  %v99_v2 = vld [vmem:[#allocation5 + $0x1a0] sm:$0xff]  ;;  %v257_v36 = vunpack.c.l.s4 %v443_v35  ;;  %v260_v39 = vshrl.u32 %v259_v37, 7 }
  0x35   :  { %338 = vmatprep.subr.bf16.mxu0 %v337_v44  ;;  %v65_v62 = vld [vmem:[#allocation5 + $0xb8] sm:$0xff]  ;;  %v313_v1 = vpack.c.bf16 %v102_v60, %v100_v59  ;;  %v101_v3 = vld [vmem:[#allocation5 + $0x1b0] sm:$0xff]  ;;  %v62_v4 = vld [vmem:[#allocation5 + $0xa0] sm:$0xff] }
  0x36   :  { %v345_v5 = vpack.c.bf16 %v65_v62, %v63_v61  ;;  %v64_v6 = vld [vmem:[#allocation5 + $0xb0] sm:$0xff]  ;;  %v104_v7 = vld [vmem:[#allocation5 + $0x1c8] sm:$0xff]  ;;  %v106_v8 = vld [vmem:[#allocation5 + $0x1d8] sm:$0xff]  ;;  %v315_v11 = vpack.c.bf16 %v101_v3, %v99_v2  ;;  %v258_v38 = vunpack.c.0.s8 %v257_v36 }
  0x37   :  { %308 = vmatpush1.bf16.msra.mxu1 %v307_v51  ;;  %v67_v9 = vld [vmem:[#allocation5 + $0xc8] sm:$0xff]  ;;  %v69_v10 = vld [vmem:[#allocation5 + $0xd8] sm:$0xff]  ;;  %v347_v12 = vpack.c.bf16 %v64_v6, %v62_v4  ;;  %v317_v13 = vpack.c.bf16 %v106_v8, %v104_v7  ;;  %v103_v14 = vld [vmem:[#allocation5 + $0x1c0] sm:$0xff] }
  0x38   :  { %340 = vmatpush1.bf16.msra.mxu0 %v339_v52  ;;  %310 = vmatprep.subr.bf16.mxu1 %v309_v53  ;;  %v105_v15 = vld [vmem:[#allocation5 + $0x1d0] sm:$0xff]  ;;  %v66_v16 = vld [vmem:[#allocation5 + $0xc0] sm:$0xff]  ;;  %v349_v17 = vpack.c.bf16 %v69_v10, %v67_v9  ;;  %v108_v19 = vld [vmem:[#allocation5 + $0x1e8] sm:$0xff]  ;;  %v261_v46 = vsub.s32 %v258_v38, %v260_v39 }
  0x39   :  { %342 = vmatprep.subr.bf16.mxu0 %v341_v57  ;;  %v68_v18 = vld [vmem:[#allocation5 + $0xd0] sm:$0xff]  ;;  %v110_v20 = vld [vmem:[#allocation5 + $0x1f8] sm:$0xff]  ;;  %v71_v21 = vld [vmem:[#allocation5 + $0xe8] sm:$0xff]  ;;  %v319_v23 = vpack.c.bf16 %v105_v15, %v103_v14 }
  0x3a   :  { %v73_v22 = vld [vmem:[#allocation5 + $0xf8] sm:$0xff]  ;;  %v351_v24 = vpack.c.bf16 %v68_v18, %v66_v16  ;;  %v321_v25 = vpack.c.bf16 %v110_v20, %v108_v19  ;;  %v107_v26 = vld [vmem:[#allocation5 + $0x1e0] sm:$0xff]  ;;  %v109_v27 = vld [vmem:[#allocation5 + $0x1f0] sm:$0xff] }
  0x3b   :  { %312 = vmatpush1.bf16.msra.mxu1 %v311_v63  ;;  %v353_v28 = vpack.c.bf16 %v73_v22, %v71_v21  ;;  %v70_v29 = vld [vmem:[#allocation5 + $0xe0] sm:$0xff]  ;;  %v72_v30 = vld [vmem:[#allocation5 + $0xf0] sm:$0xff]  ;;  %v323_v31 = vpack.c.bf16 %v109_v27, %v107_v26  ;;  %v75_v33 = vld [vmem:[#allocation2 + $0x1] sm:$0x1] }
  0x3c   :  { %344 = vmatpush1.bf16.msra.mxu0 %v343_v0  ;;  %314 = vmatprep.subr.bf16.mxu1 %v313_v1  ;;  %v355_v32 = vpack.c.bf16 %v72_v30, %v70_v29  ;;  %v38_v34 = vld [vmem:[#allocation2] sm:$0x1] }
  0x3d   :  { %346 = vmatprep.subr.bf16.mxu0 %v345_v5 }
  0x3f   :  { %316 = vmatpush1.bf16.msra.mxu1 %v315_v11 }
  0x40   :  { %348 = vmatpush1.bf16.msra.mxu0 %v347_v12  ;;  %318 = vmatprep.subr.bf16.mxu1 %v317_v13 }
  0x41   :  { %350 = vmatprep.subr.bf16.mxu0 %v349_v17 }
  0x43   :  { %320 = vmatpush1.bf16.msra.mxu1 %v319_v23 }
  0x44   :  { %352 = vmatpush1.bf16.msra.mxu0 %v351_v24  ;;  %322 = vmatprep.subr.bf16.mxu1 %v321_v25 }
  0x45   :  { %354 = vmatprep.subr.bf16.mxu0 %v353_v28 }
  0x47   :  { %324 = vmatpush1.bf16.msra.mxu1 %v323_v31 }
  0x48   :  { %356 = vmatpush1.bf16.msra.mxu0 %v355_v32 }
  0x4a   :  { %176 = vmatmul.mubr.f32.vlgmr.msra.gmra.mrb[0].mxu1 %v75_v33 }
  0x4b   :  { %247 = vmatmul.mubr.f32.vlgmr.msra.gmra.mrb[0].mxu0 %v38_v34 }
 0x11d   :  { %v177_v40 = vpop.f32.mrb[0].mxu1 }
 0x11e   :  { %v248_v41 = vpop.f32.mrb[0].mxu0  ;;  %v179_v42 = vpop.f32.mrb[1].mxu1 }
 0x11f   :  { %v249_v43 = vadd.f32 %v248_v41, %v177_v40  ;;  %v250_v44 = vpop.f32.mrb[1].mxu0 }
 0x120   :  { %v251_v45 = vadd.f32 %v250_v44, %v179_v42 }
 0x122   :  { %v255_v47 = vcombine.low %v249_v43, %v251_v45 }
 0x124   :  { %v262_v48 = vrot.slane %v255_v47, %v261_v46 }
 0x126   :  { %v269_v49 = vrot.slane %v262_v48, %v261_v46 }
 0x128   :  { %275 = vst.msk [vmem:[#allocation7] sm:$0x3] %vm273_vm0, %v269_v49 }
 0x129   :  { %421 = shalt.err (!%p418_p6)
}
 0x12a   :  { %s422_s10 = scalar_lea.hbm %s505_s2, 32 }
 0x12b   :  { %p423_p7 = scmp.ne.s32.totalorder %s505_s2, %s422_s10  ;;  %p426_p8 = scmp.lt.u32.totalorder %s422_s10, %s505_s2 }
 0x12d   :  { %p428_p9 = pnand %p426_p8, %p423_p7 }
 0x12f   :  { %431 = shalt.err (!%p428_p9)
}
 0x130   :  { %285 = dma.vmem_to_hbm [thread:$0]  %s283_s6, 32, %s505_s2, [#allocation4]  }
 0x131   :  { %436 = dma.done.wait [#allocation4], 32  }
 0x132   :  { %437 = vsyncadd [#allocation4], 4294967264 }
 0x133   :  { %289 = vsyncpa [#allocation3], 1 }
 0x134   :  { %290 = vsyncpa [#allocation6], 1 }
 0x135   :  { %291 = vsyncpa [#allocation4], 1 }

</bundles_post_ra>
